<compile_context>
chip_gen: v6e
topology: v6e:2x2x1
jax: 0.10.0
libtpu: 0.0.40
codegen_flags: <defaults>
</compile_context>

<pallas_src>
import functools

import jax
import jax.numpy as jnp
from jax.experimental import pallas as pl
from jax.experimental.pallas import tpu as pltpu

LANES = 128
# 4 inputs x 2 pipeline buffers x (T,128) f32 = 4096*T bytes; T = 2048 keeps the
# working set ~8 MiB (+4 KiB accumulator), under the 16 MiB v5e scoped-VMEM default.
MAX_ROW_TILE = 2048


def _correction_loss_kernel(recon_y_hat_ref, y_hat_ref, recon_y_ref,
                            y_hat_dist_ref, out_ref, acc_ref,
                            *, beta, inv_n):
    i = pl.program_id(0)

    @pl.when(i == 0)
    def _():
        acc_ref[...] = jnp.zeros_like(acc_ref)

    # ---- BCE(recon_y_hat, y_hat), reduction='mean' (PyTorch clamps logs at -100)
    p = recon_y_hat_ref[...].astype(jnp.float32)
    y = y_hat_ref[...].astype(jnp.float32)
    log_p = jnp.maximum(jnp.log(p), -100.0)
    log_1mp = jnp.maximum(jnp.log(1.0 - p), -100.0)
    bce = -(y * log_p + (1.0 - y) * log_1mp)

    # ---- KL( Bernoulli(recon_y) || Bernoulli(y_hat_dist) ), elementwise
    q = jnp.clip(recon_y_ref[...].astype(jnp.float32), 0.001, 0.999)
    r = jnp.clip(y_hat_dist_ref[...].astype(jnp.float32), 0.001, 0.999)
    kl = q * (jnp.log(q) - jnp.log(r)) + \
         (1.0 - q) * (jnp.log(1.0 - q) - jnp.log(1.0 - r))

    # Fused reduction: mean(bce) + beta*mean(kl) == mean(bce + beta*kl).
    contrib = bce + jnp.float32(beta) * kl                     # (T, 128), in vregs
    t = contrib.shape[0]
    # Partial reduce across sublane groups: the (T//8, 8, 128) view is aligned
    # with the native (8, 128) vreg tiling, so sum(axis=0) is plain VALU adds
    # across vregs, and only an (8, 128) slab hits VMEM each grid step.
    acc_ref[...] += contrib.reshape(t // 8, 8, LANES).sum(axis=0)

    @pl.when(i == pl.num_programs(0) - 1)
    def _():
        total = jnp.sum(acc_ref[...])                          # single cross-lane reduce
        out_ref[...] = jnp.full(out_ref.shape, total * jnp.float32(inv_n),
                                jnp.float32)                   # lane-dense write


def _flatten_pad(x, rows, fill):
    """Flatten to (rows, 128) in native dtype, padding with a neutral value."""
    flat = jnp.ravel(x)
    pad = rows * LANES - flat.shape[0]
    if pad:
        flat = jnp.concatenate([flat, jnp.full((pad,), fill, flat.dtype)])
    return flat.reshape(rows, LANES)


def correction_loss(recon_y_hat, recon_y, y_hat, y_hat_dist, beta):
    """Pallas implementation of CorrectionLoss.forward (returns a scalar f32)."""
    total_n = recon_y_hat.size

    rows = pl.cdiv(total_n, LANES)
    rows = ((rows + 7) // 8) * 8                 # sublane-align
    if rows <= MAX_ROW_TILE:
        row_tile = rows
    else:
        row_tile = MAX_ROW_TILE
        rows = ((rows + row_tile - 1) // row_tile) * row_tile

    # Neutral pads: (p=1, y=1) -> bce contribution 0 ; (q=r=0.5) -> kl contribution 0.
    args = (_flatten_pad(recon_y_hat, rows, 1.0),
            _flatten_pad(y_hat, rows, 1.0),
            _flatten_pad(recon_y, rows, 0.5),
            _flatten_pad(y_hat_dist, rows, 0.5))

    kernel = functools.partial(_correction_loss_kernel,
                               beta=float(beta), inv_n=1.0 / float(total_n))

    tile_spec = pl.BlockSpec((row_tile, LANES), lambda i: (i, 0))

    out = pl.pallas_call(
        kernel,
        out_shape=jax.ShapeDtypeStruct((1, LANES), jnp.float32),
        grid_spec=pltpu.PrefetchScalarGridSpec(
            num_scalar_prefetch=0,
            grid=(rows // row_tile,),
            in_specs=[tile_spec, tile_spec, tile_spec, tile_spec],
            out_specs=pl.BlockSpec((1, LANES), lambda i: (0, 0)),
            scratch_shapes=[pltpu.VMEM((8, LANES), jnp.float32)],
        ),
        compiler_params=pltpu.CompilerParams(
            # The grid axis carries the running accumulator -> must stay serial.
            dimension_semantics=("arbitrary",)),
    )(*args)
    return out[0, 0]


def correction_loss_ref(recon_y_hat, recon_y, y_hat, y_hat_dist, beta):
    """Pure-JAX reference matching the PyTorch module."""
    p = recon_y_hat.astype(jnp.float32)
    y = y_hat.astype(jnp.float32)
    bce = -(y * jnp.maximum(jnp.log(p), -100.0)
            + (1.0 - y) * jnp.maximum(jnp.log(1.0 - p), -100.0))
    recon_loss = jnp.mean(bce)
    q = jnp.clip(recon_y.astype(jnp.float32), 0.001, 0.999)
    r = jnp.clip(y_hat_dist.astype(jnp.float32), 0.001, 0.999)
    kl = jnp.mean(q * (jnp.log(q) - jnp.log(r))
                  + (1.0 - q) * (jnp.log(1.0 - q) - jnp.log(1.0 - r)))
    return recon_loss + beta * kl


if __name__ == "__main__":
    key = jax.random.PRNGKey(0)
    k1, k2, k3, k4 = jax.random.split(key, 4)

    shape = (2, 4, 16, 16)  # B, C, H, W  (2048 elems = 16 * 128)
    beta = 0.5

    # Probabilities in (0, 1), as produced by sigmoids in the surrounding model.
    recon_y_hat = jax.nn.sigmoid(jax.random.normal(k1, shape, jnp.float32))
    y_hat = jax.random.uniform(k2, shape, jnp.float32, 1e-3, 1.0 - 1e-3)
    recon_y = jax.random.uniform(k3, shape, jnp.float32, 0.0, 1.0)
    y_hat_dist = jax.random.uniform(k4, shape, jnp.float32, 0.0, 1.0)

    loss = correction_loss(recon_y_hat, recon_y, y_hat, y_hat_dist, beta)
    loss = jax.block_until_ready(loss)

    ref = correction_loss_ref(recon_y_hat, recon_y, y_hat, y_hat_dist, beta)
    assert jnp.allclose(loss, ref, rtol=1e-5, atol=1e-5), (loss, ref)

    print("KERNEL_OK")
</pallas_src>

<mosaic_0001>
module attributes {stable_mosaic.version = 11 : i64} {
  func.func @_correction_loss_kernel(%arg0: i32, %arg1: memref<16x128xf32, #tpu.memory_space<vmem>>, %arg2: memref<16x128xf32, #tpu.memory_space<vmem>>, %arg3: memref<16x128xf32, #tpu.memory_space<vmem>>, %arg4: memref<16x128xf32, #tpu.memory_space<vmem>>, %arg5: memref<1x128xf32, #tpu.memory_space<vmem>>, %arg6: memref<8x128xf32, #tpu.memory_space<vmem>>) attributes {dimension_semantics = [#tpu.dimension_semantics<arbitrary>], iteration_bounds = array<i64: 1>, scalar_prefetch = 0 : i64, scratch_operands = 1 : i64, tpu.core_type = #tpu.core_type<tc>, window_params = [{transform_indices = @transform_0, window_bounds = array<i64: 16, 128>}, {transform_indices = @transform_1, window_bounds = array<i64: 16, 128>}, {transform_indices = @transform_2, window_bounds = array<i64: 16, 128>}, {transform_indices = @transform_3, window_bounds = array<i64: 16, 128>}, {pipeline_mode = #tpu.pipeline_mode<synchronous>, transform_indices = @transform_4, window_bounds = array<i64: 1, 128>}]} {
    %c0_i32 = arith.constant 0 : i32
    %0 = arith.cmpi eq, %arg0, %c0_i32 : i32
    %1 = arith.extui %0 : i1 to i32
    %c0_i32_0 = arith.constant 0 : i32
    %2 = arith.cmpi ne, %1, %c0_i32_0 : i32
    scf.if %2 {
      %cst_27 = arith.constant 0.000000e+00 : f32
      %56 = vector.broadcast %cst_27 : f32 to vector<8x128xf32>
      %c0_28 = arith.constant 0 : index
      %c0_29 = arith.constant 0 : index
      %57 = vector.load %arg6[%c0_28, %c0_29] : memref<8x128xf32, #tpu.memory_space<vmem>>, vector<8x128xf32>
      tpu.vector_store %arg6[%c0_28, %c0_29], %56 {strides = array<i32>} : memref<8x128xf32, #tpu.memory_space<vmem>>, vector<8x128xf32>,
    } else {
    }
    %c0 = arith.constant 0 : index
    %c0_1 = arith.constant 0 : index
    %3 = vector.load %arg1[%c0, %c0_1] : memref<16x128xf32, #tpu.memory_space<vmem>>, vector<16x128xf32>
    %c0_2 = arith.constant 0 : index
    %c0_3 = arith.constant 0 : index
    %4 = vector.load %arg2[%c0_2, %c0_3] : memref<16x128xf32, #tpu.memory_space<vmem>>, vector<16x128xf32>
    %5 = math.log %3 : vector<16x128xf32>
    %cst = arith.constant -1.000000e+02 : f32
    %6 = vector.broadcast %cst : f32 to vector<16x128xf32>
    %7 = arith.maximumf %5, %6 : vector<16x128xf32>
    %cst_4 = arith.constant 1.000000e+00 : f32
    %8 = vector.broadcast %cst_4 : f32 to vector<16x128xf32>
    %9 = arith.subf %8, %3 : vector<16x128xf32>
    %10 = math.log %9 : vector<16x128xf32>
    %cst_5 = arith.constant -1.000000e+02 : f32
    %11 = vector.broadcast %cst_5 : f32 to vector<16x128xf32>
    %12 = arith.maximumf %10, %11 : vector<16x128xf32>
    %13 = arith.mulf %4, %7 : vector<16x128xf32>
    %cst_6 = arith.constant 1.000000e+00 : f32
    %14 = vector.broadcast %cst_6 : f32 to vector<16x128xf32>
    %15 = arith.subf %14, %4 : vector<16x128xf32>
    %16 = arith.mulf %15, %12 : vector<16x128xf32>
    %17 = arith.addf %13, %16 : vector<16x128xf32>
    %cst_7 = arith.constant 0.000000e+00 : f32
    %18 = vector.broadcast %cst_7 : f32 to vector<16x128xf32>
    %19 = arith.subf %18, %17 : vector<16x128xf32>
    %c0_8 = arith.constant 0 : index
    %c0_9 = arith.constant 0 : index
    %20 = vector.load %arg3[%c0_8, %c0_9] : memref<16x128xf32, #tpu.memory_space<vmem>>, vector<16x128xf32>
    %cst_10 = arith.constant 1.000000e-03 : f32
    %cst_11 = arith.constant 9.990000e-01 : f32
    %21 = vector.broadcast %cst_10 : f32 to vector<16x128xf32>
    %22 = arith.maximumf %21, %20 : vector<16x128xf32>
    %23 = vector.broadcast %cst_11 : f32 to vector<16x128xf32>
    %24 = arith.minimumf %23, %22 : vector<16x128xf32>
    %c0_12 = arith.constant 0 : index
    %c0_13 = arith.constant 0 : index
    %25 = vector.load %arg4[%c0_12, %c0_13] : memref<16x128xf32, #tpu.memory_space<vmem>>, vector<16x128xf32>
    %cst_14 = arith.constant 1.000000e-03 : f32
    %cst_15 = arith.constant 9.990000e-01 : f32
    %26 = vector.broadcast %cst_14 : f32 to vector<16x128xf32>
    %27 = arith.maximumf %26, %25 : vector<16x128xf32>
    %28 = vector.broadcast %cst_15 : f32 to vector<16x128xf32>
    %29 = arith.minimumf %28, %27 : vector<16x128xf32>
    %30 = math.log %24 : vector<16x128xf32>
    %31 = math.log %29 : vector<16x128xf32>
    %32 = arith.subf %30, %31 : vector<16x128xf32>
    %33 = arith.mulf %24, %32 : vector<16x128xf32>
    %cst_16 = arith.constant 1.000000e+00 : f32
    %34 = vector.broadcast %cst_16 : f32 to vector<16x128xf32>
    %35 = arith.subf %34, %24 : vector<16x128xf32>
    %cst_17 = arith.constant 1.000000e+00 : f32
    %36 = vector.broadcast %cst_17 : f32 to vector<16x128xf32>
    %37 = arith.subf %36, %24 : vector<16x128xf32>
    %38 = math.log %37 : vector<16x128xf32>
    %cst_18 = arith.constant 1.000000e+00 : f32
    %39 = vector.broadcast %cst_18 : f32 to vector<16x128xf32>
    %40 = arith.subf %39, %29 : vector<16x128xf32>
    %41 = math.log %40 : vector<16x128xf32>
    %42 = arith.subf %38, %41 : vector<16x128xf32>
    %43 = arith.mulf %35, %42 : vector<16x128xf32>
    %44 = arith.addf %33, %43 : vector<16x128xf32>
    %cst_19 = arith.constant 5.000000e-01 : f32
    %45 = vector.broadcast %cst_19 : f32 to vector<16x128xf32>
    %46 = arith.mulf %45, %44 : vector<16x128xf32>
    %47 = arith.addf %19, %46 : vector<16x128xf32>
    %c0_20 = arith.constant 0 : index
    %c0_21 = arith.constant 0 : index
    %48 = vector.load %arg6[%c0_20, %c0_21] : memref<8x128xf32, #tpu.memory_space<vmem>>, vector<8x128xf32>
    %49 = vector.shape_cast %47 : vector<16x128xf32> to vector<2x8x128xf32>
    %cst_22 = arith.constant dense<0.000000e+00> : vector<8x128xf32>
    %50 = vector.multi_reduction <add>, %49, %cst_22 [0] : vector<2x8x128xf32> to vector<8x128xf32>
    %51 = arith.addf %48, %50 : vector<8x128xf32>
    %c0_23 = arith.constant 0 : index
    %c0_24 = arith.constant 0 : index
    %52 = vector.load %arg6[%c0_23, %c0_24] : memref<8x128xf32, #tpu.memory_space<vmem>>, vector<8x128xf32>
    tpu.vector_store %arg6[%c0_23, %c0_24], %51 {strides = array<i32>} : memref<8x128xf32, #tpu.memory_space<vmem>>, vector<8x128xf32>,
    %c0_i32_25 = arith.constant 0 : i32
    %53 = arith.cmpi eq, %arg0, %c0_i32_25 : i32
    %54 = arith.extui %53 : i1 to i32
    %c0_i32_26 = arith.constant 0 : i32
    %55 = arith.cmpi ne, %54, %c0_i32_26 : i32
    scf.if %55 {
      %c0_27 = arith.constant 0 : index
      %c0_28 = arith.constant 0 : index
      %56 = vector.load %arg6[%c0_27, %c0_28] : memref<8x128xf32, #tpu.memory_space<vmem>>, vector<8x128xf32>
      %57 = vector.shape_cast %56 : vector<8x128xf32> to vector<1x8x128xf32>
      %cst_29 = arith.constant dense<0.000000e+00> : vector<1xf32>
      %58 = vector.multi_reduction <add>, %57, %cst_29 [1, 2] : vector<1x8x128xf32> to vector<1xf32>
      %59 = vector.shape_cast %58 : vector<1xf32> to vector<1x1x1xf32>
      %60 = vector.extract %59[0, 0, 0] : f32 from vector<1x1x1xf32>
      %cst_30 = arith.constant 4.8828125E-4 : f32
      %61 = arith.mulf %60, %cst_30 : f32
      %62 = vector.broadcast %61 : f32 to vector<1x128xf32>
      %c0_31 = arith.constant 0 : index
      %c0_32 = arith.constant 0 : index
      %63 = vector.load %arg5[%c0_31, %c0_32] : memref<1x128xf32, #tpu.memory_space<vmem>>, vector<1x128xf32>
      tpu.vector_store %arg5[%c0_31, %c0_32], %62 {strides = array<i32>} : memref<1x128xf32, #tpu.memory_space<vmem>>, vector<1x128xf32>,
    } else {
    }
    return
  }
  func.func @transform_0(%arg0: i32) -> (i32, i32) {
    %c0_i32 = arith.constant 0 : i32
    %c0_i32_0 = arith.constant 0 : i32
    return %arg0, %c0_i32 : i32, i32
  }
  func.func @transform_1(%arg0: i32) -> (i32, i32) {
    %c0_i32 = arith.constant 0 : i32
    %c0_i32_0 = arith.constant 0 : i32
    return %arg0, %c0_i32 : i32, i32
  }
  func.func @transform_2(%arg0: i32) -> (i32, i32) {
    %c0_i32 = arith.constant 0 : i32
    %c0_i32_0 = arith.constant 0 : i32
    return %arg0, %c0_i32 : i32, i32
  }
  func.func @transform_3(%arg0: i32) -> (i32, i32) {
    %c0_i32 = arith.constant 0 : i32
    %c0_i32_0 = arith.constant 0 : i32
    return %arg0, %c0_i32 : i32, i32
  }
  func.func @transform_4(%arg0: i32) -> (i32, i32) {
    %c0_i32 = arith.constant 0 : i32
    %c0_i32_0 = arith.constant 0 : i32
    %c0_i32_1 = arith.constant 0 : i32
    return %c0_i32, %c0_i32_0 : i32, i32
  }
}

</mosaic_0001>

<bundles_post_ra>
// kernel: tpu_custom_call.1
= control target key start
LH: loop header
LB: loop body
LE: loop exit
PB: predicated region body
PF: predicated region fallthrough
CT: control target
= control target key end

     0   :  { %9 = vsyncpa [#allocation4], 0  ;;  %s389_s0 = inlined_call_operand.hbm [shape: f32[16,128], index: 0, kind: input, shape index: {}]   ;;  %s390_s1 = inlined_call_operand.hbm [shape: f32[16,128], index: 1, kind: input, shape index: {}]   ;;  %s391_s2 = inlined_call_operand.hbm [shape: f32[16,128], index: 2, kind: input, shape index: {}]   ;;  %s392_s3 = inlined_call_operand.hbm [shape: f32[16,128], index: 3, kind: input, shape index: {}]   ;;  %s393_s4 = inlined_call_operand.hbm [shape: f32[1,128], index: 4, kind: output, shape index: {}]  }
   0x1   :  { %10 = vsyncpa [#allocation7], 0 }
   0x2   :  { %11 = vsyncpa [#allocation10], 0 }
   0x3   :  { %12 = vsyncpa [#allocation5], 0  ;;  %s330_s15 = smov [#allocation6]   ;;  %s331_s17 = smov [#allocation3]  }
   0x4   :  { %s30_s16 = sshll.u32 %s330_s15, 4  ;;  %s18_s18 = sshll.u32 %s331_s17, 4  ;;  %s31_s16 = int_to_ptr.vmem [resolvable:$true] %s30_s16  ;;  %s19_s18 = int_to_ptr.vmem [resolvable:$true] %s18_s18 }
   0x5   :  { %s230_s19 = scalar_lea.vmem %s31_s16, 256  ;;  %p235_p1 = scmp.lt.s32.totalorder %s31_s16, %s31_s16 }
   0x6   :  { %p231_p0 = scmp.ne.s32.totalorder %s31_s16, %s230_s19  ;;  %p236_p2 = scmp.lt.s32.totalorder %s230_s19, %s230_s19 }
   0x8   :  { %p237_p3 = por %p236_p2, %p235_p1 }
   0xa   :  { %p238_p4 = pnand %p237_p3, %p231_p0 }
   0xc   :  { %241 = shalt.err (!%p238_p4)
}
   0xd   :  { %s332_s20 = smov 128   ;;  %s333_s21 = smov 8  }
   0xe   :  { %36 = dma.hbm_to_vmem [thread:$0]  %s390_s1, 256, %s31_s16, [#allocation7], %s332_s20, %s332_s20, %s333_s21  }
   0xf   :  { %s250_s24 = scalar_lea.vmem %s19_s18, 256  ;;  %p255_p6 = scmp.lt.s32.totalorder %s19_s18, %s19_s18 }
  0x10   :  { %p251_p5 = scmp.ne.s32.totalorder %s19_s18, %s250_s24  ;;  %p256_p7 = scmp.lt.s32.totalorder %s250_s24, %s250_s24 }
  0x12   :  { %p257_p8 = por %p256_p7, %p255_p6 }
  0x14   :  { %p258_p9 = pnand %p257_p8, %p251_p5 }
  0x16   :  { %261 = shalt.err (!%p258_p9)
}
  0x17   :  { %24 = dma.hbm_to_vmem [thread:$0]  %s389_s0, 256, %s19_s18, [#allocation4], %s332_s20, %s332_s20, %s333_s21  }
  0x18   :  { %s334_s27 = smov [#allocation8]   ;;  %s335_s29 = smov [#allocation9]  }
  0x19   :  { %s42_s28 = sshll.u32 %s334_s27, 4  ;;  %s54_s30 = sshll.u32 %s335_s29, 4  ;;  %s43_s28 = int_to_ptr.vmem [resolvable:$true] %s42_s28  ;;  %s55_s30 = int_to_ptr.vmem [resolvable:$true] %s54_s30 }
  0x1a   :  { %s270_s1 = scalar_lea.vmem %s43_s28, 256  ;;  %p275_p11 = scmp.lt.s32.totalorder %s43_s28, %s43_s28 }
  0x1b   :  { %p271_p10 = scmp.ne.s32.totalorder %s43_s28, %s270_s1  ;;  %p276_p12 = scmp.lt.s32.totalorder %s270_s1, %s270_s1 }
  0x1d   :  { %p277_p13 = por %p276_p12, %p275_p11 }
  0x1f   :  { %p278_p0 = pnand %p277_p13, %p271_p10 }
  0x21   :  { %281 = shalt.err (!%p278_p0)
}
  0x22   :  { %48 = dma.hbm_to_vmem [thread:$0]  %s391_s2, 256, %s43_s28, [#allocation7], %s332_s20, %s332_s20, %s333_s21  }
  0x23   :  { %s290_s0 = scalar_lea.vmem %s55_s30, 256  ;;  %p295_p2 = scmp.lt.s32.totalorder %s55_s30, %s55_s30 }
  0x24   :  { %p291_p1 = scmp.ne.s32.totalorder %s55_s30, %s290_s0  ;;  %p296_p3 = scmp.lt.s32.totalorder %s290_s0, %s290_s0 }
  0x26   :  { %p297_p4 = por %p296_p3, %p295_p2 }
  0x28   :  { %p298_p5 = pnand %p297_p4, %p291_p1 }
  0x2a   :  { %301 = shalt.err (!%p298_p5)
}
  0x2b   :  { %60 = dma.hbm_to_vmem [thread:$0]  %s392_s3, 256, %s55_s30, [#allocation10], %s332_s20, %s332_s20, %s333_s21  }
  0x2c   :  { %322 = dma.done.wait [#allocation4], 256  }
  0x2d   :  { %323 = vsyncadd [#allocation4], 4294967040 }
  0x2e   :  { %324 = dma.done.wait [#allocation7], 512  }
  0x2f   :  { %325 = vsyncadd [#allocation7], 4294966784 }
  0x30   :  { %326 = dma.done.wait [#allocation10], 256  }
  0x31   :  { %327 = vsyncadd [#allocation10], 4294967040  ;;  %v78_v0 = vld [vmem:[#allocation3] sm:$0xff]  ;;  %v79_v1 = vld [vmem:[#allocation3 + $0x8] sm:$0xff]  ;;  %s336_s2 = smov [#allocation11]  }
  0x32   :  { %198 = vlog2.f32 %v78_v0  ;;  %v88_v2 = vsub.f32 1.0, %v78_v0  ;;  %v89_v3 = vsub.f32 1.0, %v79_v1  ;;  %v106_v4 = vld [vmem:[#allocation8] sm:$0xff]  ;;  %v107_v5 = vld [vmem:[#allocation8 + $0x8] sm:$0xff]  ;;  %v112_v8 = vld [vmem:[#allocation9] sm:$0xff]  ;;  %s178_s3 = sshll.u32 %s336_s2, 4  ;;  %s179_s3 = int_to_ptr.vmem [resolvable:$true] %s178_s3 }
  0x33   :  { %200 = vlog2.f32 %v79_v1  ;;  %v108_v6 = vmax.f32 %v106_v4, 0.001  ;;  %v109_v7 = vmax.f32 %v107_v5, 0.001  ;;  %v113_v9 = vld [vmem:[#allocation9 + $0x8] sm:$0xff]  ;;  %v80_v25 = vld [vmem:[#allocation6] sm:$0xff]  ;;  %p307_p7 = scmp.lt.s32.totalorder %s179_s3, %s179_s3 }
  0x34   :  { %202 = vlog2.f32 %v88_v2  ;;  %v114_v10 = vmax.f32 %v112_v8, 0.001  ;;  %v115_v13 = vmax.f32 %v113_v9, 0.001  ;;  %v81_v28 = vld [vmem:[#allocation6 + $0x8] sm:$0xff]  ;;  %v98_v34 = vsub.f32 1.0, %v80_v25 }
  0x35   :  { %204 = vlog2.f32 %v89_v3  ;;  %v110_v11 = vmin.f32 %v108_v6, 0.999  ;;  %v111_v12 = vmin.f32 %v109_v7, 0.999  ;;  %v99_v39 = vsub.f32 1.0, %v81_v28  ;;  %s302_s11 = scalar_lea.vmem %s179_s3, 16 }
  0x36   :  { %v116_v14 = vmin.f32 %v114_v10, 0.999  ;;  %v117_v15 = vmin.f32 %v115_v13, 0.999  ;;  %p303_p6 = scmp.ne.s32.totalorder %s179_s3, %s302_s11  ;;  %s306_s12 = scalar_lea.vmem %s179_s3, 32 }
  0x37   :  { %206 = vlog2.f32 %v110_v11  ;;  %v130_v16 = vsub.f32 1.0, %v110_v11  ;;  %v131_v17 = vsub.f32 1.0, %v111_v12  ;;  %p308_p8 = scmp.lt.s32.totalorder %s306_s12, %s302_s11 }
  0x38   :  { %208 = vlog2.f32 %v111_v12  ;;  %v136_v18 = vsub.f32 1.0, %v116_v14  ;;  %v137_v19 = vsub.f32 1.0, %v117_v15 }
  0x39   :  { %210 = vlog2.f32 %v116_v14  ;;  %p309_p9 = por %p308_p8, %p307_p7 }
  0x3a   :  { %212 = vlog2.f32 %v117_v15 }
  0x3b   :  { %214 = vlog2.f32 %v130_v16  ;;  %p310_p10 = pnand %p309_p9, %p303_p6 }
  0x3c   :  { %216 = vlog2.f32 %v131_v17 }
  0x3d   :  { %218 = vlog2.f32 %v136_v18 }
  0x3e   :  { %220 = vlog2.f32 %v137_v19 }
  0x3f   :  { %v199_v20 = vpop.eup %198 }
  0x40   :  { %v201_v21 = vpop.eup %200  ;;  %v83_v23 = vmul.f32 0.6931472, %v199_v20 }
  0x41   :  { %v203_v22 = vpop.eup %202  ;;  %v85_v26 = vmul.f32 0.6931472, %v201_v21 }
  0x42   :  { %v205_v24 = vpop.eup %204  ;;  %v91_v27 = vmul.f32 0.6931472, %v203_v22  ;;  %v86_v32 = vmax.f32 %v83_v23, -100.0 }
  0x43   :  { %v93_v29 = vmul.f32 0.6931472, %v205_v24  ;;  %v87_v37 = vmax.f32 %v85_v26, -100.0 }
  0x44   :  { %v207_v30 = vpop.eup %206  ;;  %v94_v33 = vmax.f32 %v91_v27, -100.0  ;;  %v96_v46 = vmul.f32 %v86_v32, %v80_v25 }
  0x45   :  { %v209_v31 = vpop.eup %208  ;;  %v119_v35 = vmul.f32 0.6931472, %v207_v30  ;;  %v95_v38 = vmax.f32 %v93_v29, -100.0  ;;  %v97_v51 = vmul.f32 %v87_v37, %v81_v28 }
  0x46   :  { %v211_v36 = vpop.eup %210  ;;  %v121_v40 = vmul.f32 0.6931472, %v209_v31  ;;  %v100_v47 = vmul.f32 %v98_v34, %v94_v33 }
  0x47   :  { %v213_v41 = vpop.eup %212  ;;  %v123_v42 = vmul.f32 0.6931472, %v211_v36  ;;  %v101_v52 = vmul.f32 %v99_v39, %v95_v38 }
  0x48   :  { %v215_v43 = vpop.eup %214  ;;  %v125_v44 = vmul.f32 0.6931472, %v213_v41  ;;  %v102_v58 = vadd.f32 %v100_v47, %v96_v46 }
  0x49   :  { %v217_v45 = vpop.eup %216  ;;  %v126_v48 = vsub.f32 %v119_v35, %v123_v42  ;;  %v133_v49 = vmul.f32 0.6931472, %v215_v43  ;;  %v103_v61 = vadd.f32 %v101_v52, %v97_v51 }
  0x4a   :  { %v219_v50 = vpop.eup %218  ;;  %v127_v53 = vsub.f32 %v121_v40, %v125_v44  ;;  %v135_v54 = vmul.f32 0.6931472, %v217_v45  ;;  %v104_v2 = vsub.f32 0.0, %v102_v58 }
  0x4b   :  { %v221_v55 = vpop.eup %220  ;;  %v139_v56 = vmul.f32 0.6931472, %v219_v50  ;;  %v128_v59 = vmul.f32 %v126_v48, %v110_v11  ;;  %v105_v4 = vsub.f32 0.0, %v103_v61 }
  0x4c   :  { %v141_v57 = vmul.f32 0.6931472, %v221_v55  ;;  %v129_v62 = vmul.f32 %v127_v53, %v111_v12 }
  0x4d   :  { %v142_v60 = vsub.f32 %v133_v49, %v139_v56 }
  0x4e   :  { %v143_v63 = vsub.f32 %v135_v54, %v141_v57 }
  0x4f   :  { %v144_v0 = vmul.f32 %v142_v60, %v130_v16 }
  0x50   :  { %v145_v1 = vmul.f32 %v143_v63, %v131_v17 }
  0x51   :  { %v146_v3 = vadd.f32 %v144_v0, %v128_v59 }
  0x52   :  { %v147_v5 = vadd.f32 %v145_v1, %v129_v62 }
  0x53   :  { %v148_v6 = vmul.f32 0.5, %v146_v3 }
  0x54   :  { %v149_v7 = vmul.f32 0.5, %v147_v5 }
  0x55   :  { %v150_v8 = vadd.f32 %v148_v6, %v104_v2 }
  0x56   :  { %v151_v9 = vadd.f32 %v149_v7, %v105_v4 }
  0x58   :  { %v153_v10 = vadd.f32 %v151_v9, %v150_v8 }
  0x5a   :  { %160 = vadd.xlane.f32.xlu0 %v153_v10 }
  0xe3   :  { %v161_v13 = vpop.xlane.xlu0 %160 }
  0xe4   :  { %v162_v14 = vrot.slane %v161_v13, 4 }
  0xe6   :  { %v163_v15 = vadd.f32 %v162_v14, %v161_v13 }
  0xe8   :  { %v164_v11 = vrot.slane %v163_v15, 2 }
  0xea   :  { %v165_v18 = vadd.f32 %v164_v11, %v163_v15 }
  0xec   :  { %v166_v19 = vrot.slane %v165_v18, 1 }
  0xee   :  { %v167_v12 = vadd.f32 %v166_v19, %v165_v18 }
  0xf0   :  { %189 = vpush %v167_v12 }
 0x121   :  { %s190_s9 = spop %189 }
 0x122   :  { %s169_s10 = smul.f32 0.00048828125, %s190_s9 }
 0x124   :  { %v170_v16 = vstv %s169_s10 }
 0x125   :  { %171 = vst [vmem:[#allocation11] sm:$0x1] %v170_v16 }
 0x126   :  { %313 = shalt.err (!%p310_p10)
}
 0x127   :  { %181 = dma.vmem_to_hbm [thread:$0]  %s179_s3, 16, %s393_s4, [#allocation5]  }
 0x128   :  { %328 = dma.done.wait [#allocation5], 16  }
 0x129   :  { %329 = vsyncadd [#allocation5], 4294967280 }
 0x12a   :  { %185 = vsyncpa [#allocation4], 1 }
 0x12b   :  { %186 = vsyncpa [#allocation7], 1 }
 0x12c   :  { %187 = vsyncpa [#allocation10], 1 }
 0x12d   :  { %188 = vsyncpa [#allocation5], 1 }

</bundles_post_ra>
